<compile_context>
chip_gen: v7x
topology: tpu7x:2x2x1
jax: 0.10.0
libtpu: 0.0.40
codegen_flags: <defaults>
</compile_context>

<pallas_src>
import functools
import math

import jax
import jax.numpy as jnp
from jax import lax
from jax.experimental import pallas as pl
from jax.experimental.pallas import tpu as pltpu


def _round_up(x, m):
    return ((x + m - 1) // m) * m


def _make_sdpa_kernel(*, scale, masked, with_attn):
    def kernel(*refs):
        q_ref, k_ref, v_ref = refs[0], refs[1], refs[2]
        pos = 3
        mask_ref = None
        if masked:
            mask_ref = refs[pos]
            pos += 1
        ctx_ref = refs[pos]
        pos += 1
        attn_ref = None
        if with_attn:
            attn_ref = refs[pos]
            pos += 1
        kb_ref, vb_ref = refs[pos], refs[pos + 1]

        # K/V are resident across the Lq-tile axis (their index_map ignores the
        # tile index), so hoist their bf16 casts: do them once per batch
        # instead of once per grid step.  Requires the Lq-tile axis to be
        # "arbitrary" (sequential on one core) — see dimension_semantics below.
        @pl.when(pl.program_id(1) == 0)
        def _():
            kb_ref[...] = k_ref[0].astype(jnp.bfloat16)
            vb_ref[...] = v_ref[0].astype(jnp.bfloat16)

        # Fold the scale into q in f32 (TQ*D muls), then cast to bf16 for the
        # MXU.  Accumulation stays in f32 via preferred_element_type.
        q = q_ref[0].astype(jnp.float32)
        if scale is not None:
            q = q * jnp.float32(scale)
        qb = q.astype(jnp.bfloat16)

        # scores = q @ k^T : NT dot_general (contract last dim of both).  This
        # is the MXU-native transposed-RHS path (same as the reference
        # flash-attention kernel), so no per-step XLU transpose is needed.
        s = lax.dot_general(qb, kb_ref[...],
                            dimension_numbers=(((1,), (1,)), ((), ())),
                            preferred_element_type=jnp.float32)   # (TQ, Lk) f32

        if masked:
            mvals = mask_ref[0]                                   # (TQ|1, Lk)
            mbool = mvals if mvals.dtype == jnp.bool_ else (mvals != 0)
            # masked_fill_(mask, -inf).  Fully-masked rows intentionally give
            # NaN (exp(-inf - -inf)), matching PyTorch masked_fill + softmax.
            s = jnp.where(mbool, -jnp.inf, s)

        # softmax over the key axis.
        m = jnp.max(s, axis=-1, keepdims=True)
        p = jnp.exp(s - m)
        denom = jnp.sum(p, axis=-1, keepdims=True)
        attn = p * pl.reciprocal(denom, approx=True)              # EUP vrcp

        # dropout(p=0.0) is the identity.
        # TODO(synk): nonzero attention_dropout would need pltpu.prng_* sampling.

        if with_attn:
            attn_ref[0] = attn.astype(attn_ref.dtype)
        ctx_ref[0] = jnp.dot(attn.astype(jnp.bfloat16), vb_ref[...],
                             preferred_element_type=jnp.float32
                             ).astype(ctx_ref.dtype)

    return kernel


def scaled_dot_product_attention(q, k, v, scale=None, attn_mask=None,
                                 q_tile=None, return_attention=True):
    """q: (B, Lq, D), k: (B, Lk, D), v: (B, Lk, Dv).

    attn_mask: optional bool/int mask, shape (B, Lq, Lk) or broadcastable
    (B, 1, Lk); True/nonzero positions are masked to -inf before softmax.
    Returns (context, attention) like the PyTorch module, or just context if
    return_attention=False.
    """
    B, Lq, D = q.shape
    Bk, Lk, Dk = k.shape
    Bv, Lkv, Dv = v.shape
    assert Bk == B and Bv == B and Dk == D and Lkv == Lk

    itemsize = jnp.dtype(q.dtype).itemsize
    # sublane tile for the block's second-to-last dim (f32: 8, bf16: 16, i8: 32)
    sub = {4: 8, 2: 16, 1: 32}.get(itemsize, 8)

    masked = attn_mask is not None
    mask_resident = False
    mask = None
    if masked:
        assert attn_mask.shape[0] == B and attn_mask.shape[2] == Lk
        assert attn_mask.shape[1] in (1, Lq)
        mask_resident = attn_mask.shape[1] == 1
        mask = attn_mask
        # bool / int8 masks pass through untouched (no extra HBM pass);
        # wider dtypes get compacted once.
        if jnp.dtype(mask.dtype).itemsize != 1:
            mask = mask.astype(jnp.int8)

    # ---- per-generation VMEM budget -------------------------------------
    try:
        vmem_cap = int(pltpu.get_tpu_info().vmem_capacity_bytes)
    except Exception:  # pragma: no cover - conservative fallback
        vmem_cap = 64 << 20
    budget = (vmem_cap * 85) // 100

    if q_tile is None:
        # 128 MiB parts (v5e/v6e): bigger Q tiles amortize step overhead and
        # lengthen the attn vst runs; 64 MiB parts (v7x): stay smaller.
        q_tile = 512 if vmem_cap >= (96 << 20) else 256

    def vmem_estimate(tq, kv_buffers):
        e = 2 * tq * D * itemsize                         # q blocks (x2)
        e += kv_buffers * Lk * D * itemsize               # k blocks
        e += kv_buffers * Lk * Dv * itemsize              # v blocks
        e += 2 * tq * Dv * itemsize                       # ctx out blocks
        if return_attention:
            e += 2 * tq * Lk * itemsize                   # attn out blocks
        if masked:
            e += 2 * (Lk if mask_resident else tq * Lk)   # 1-byte mask blocks
        e += 2 * (Lk * D + Lk * Dv)                       # bf16 K/V scratch
        e += 3 * tq * Lk * 4                              # f32 score/prob temps
        return e

    TQ = min(_round_up(Lq, sub), max(sub, q_tile - q_tile % sub))
    kv_buffers = 2
    if vmem_estimate(TQ, kv_buffers) > budget:
        # K/V only change once per batch -> single-buffering them costs one
        # exposed DMA per batch and halves their VMEM footprint.
        kv_buffers = 1
    while vmem_estimate(TQ, kv_buffers) > budget and TQ > sub:
        TQ = max(sub, (TQ // 2) - (TQ // 2) % sub)
    # TODO(synk): for very long Lk on 64 MiB-VMEM parts an inner Lk grid axis
    # with online-softmax accumulation would remove the remaining ceiling, but
    # it conflicts with returning the dense (B, Lq, Lk) attention matrix.

    need = vmem_estimate(TQ, kv_buffers)
    vmem_limit = min(max(need + (8 << 20), 32 << 20), budget)
    vmem_limit = int(min(max(vmem_limit, need + (2 << 20)), vmem_cap))

    # ---- ragged Lq: pad to a TQ multiple, slice back afterwards ----------
    Lq_pad = _round_up(Lq, TQ)
    qp = q
    maskp = mask
    if Lq_pad != Lq:
        qp = jnp.pad(q, ((0, 0), (0, Lq_pad - Lq), (0, 0)))
        if masked and not mask_resident:
            maskp = jnp.pad(mask, ((0, 0), (0, Lq_pad - Lq), (0, 0)))
    grid = (B, Lq_pad // TQ)

    # ---- specs ------------------------------------------------------------
    def kv_spec(block_shape):
        if kv_buffers == 1:
            return pl.BlockSpec(block_shape, lambda b, i: (b, 0, 0),
                                pipeline_mode=pl.Buffered(1))
        return pl.BlockSpec(block_shape, lambda b, i: (b, 0, 0))

    in_specs = [
        pl.BlockSpec((1, TQ, D), lambda b, i: (b, i, 0)),
        kv_spec((1, Lk, D)),       # K resident per batch
        kv_spec((1, Lk, Dv)),      # V resident per batch
    ]
    operands = [qp, k, v]
    if masked:
        if mask_resident:
            in_specs.append(pl.BlockSpec((1, 1, Lk), lambda b, i: (b, 0, 0)))
        else:
            in_specs.append(pl.BlockSpec((1, TQ, Lk), lambda b, i: (b, i, 0)))
        operands.append(maskp)

    out_specs = [pl.BlockSpec((1, TQ, Dv), lambda b, i: (b, i, 0))]
    out_shape = [jax.ShapeDtypeStruct((B, Lq_pad, Dv), q.dtype)]
    if return_attention:
        out_specs.append(pl.BlockSpec((1, TQ, Lk), lambda b, i: (b, i, 0)))
        out_shape.append(jax.ShapeDtypeStruct((B, Lq_pad, Lk), q.dtype))

    scratch_shapes = [pltpu.VMEM((Lk, D), jnp.bfloat16),    # K, bf16, per batch
                      pltpu.VMEM((Lk, Dv), jnp.bfloat16)]   # V, bf16, per batch

    kernel = _make_sdpa_kernel(scale=scale, masked=masked,
                               with_attn=return_attention)

    outs = pl.pallas_call(
        kernel,
        out_shape=tuple(out_shape),
        grid_spec=pltpu.PrefetchScalarGridSpec(
            num_scalar_prefetch=0,
            grid=grid,
            in_specs=in_specs,
            out_specs=tuple(out_specs),
            scratch_shapes=scratch_shapes,
        ),
        compiler_params=pltpu.CompilerParams(
            # batch axis parallel (megacore split on b keeps K/V residency and
            # the per-batch scratch hoist intact); Lq-tile axis sequential.
            dimension_semantics=("parallel", "arbitrary"),
            vmem_limit_bytes=vmem_limit,
        ),
    )(*operands)

    if return_attention:
        ctx, attn = outs
    else:
        (ctx,) = outs
        attn = None

    if Lq_pad != Lq:
        ctx = ctx[:, :Lq]
        if return_attention:
            attn = attn[:, :Lq]
    return (ctx, attn) if return_attention else ctx


def _reference(q, k, v, scale=None, attn_mask=None):
    s = jnp.einsum("bqd,bkd->bqk", q.astype(jnp.float32), k.astype(jnp.float32))
    if scale is not None:
        s = s * scale
    if attn_mask is not None:
        s = jnp.where(attn_mask, -jnp.inf, s)
    attn = jax.nn.softmax(s, axis=2)
    ctx = jnp.einsum("bqk,bkd->bqd", attn, v.astype(jnp.float32))
    return ctx.astype(q.dtype), attn.astype(q.dtype)


if __name__ == "__main__":
    key = jax.random.PRNGKey(0)
    kq, kk, kv, km, kq2 = jax.random.split(key, 5)

    B, Lq, Lk, D, Dv = 2, 256, 128, 64, 64
    q = jax.random.normal(kq, (B, Lq, D), dtype=jnp.float32)
    k = jax.random.normal(kk, (B, Lk, D), dtype=jnp.float32)
    v = jax.random.normal(kv, (B, Lk, Dv), dtype=jnp.float32)
    scale = 1.0 / math.sqrt(D)
    # bf16 MXU operands vs f32 reference -> relaxed tolerance.
    TOL = dict(atol=2.5e-2, rtol=2.5e-2)

    # 1) no mask; q_tile=128 -> grid (B, 2), exercises the per-batch K/V
    #    scratch hoist being reused across Lq-tile steps.
    ctx, attn = scaled_dot_product_attention(q, k, v, scale=scale, q_tile=128)
    jax.block_until_ready((ctx, attn))
    rctx, rattn = _reference(q, k, v, scale=scale)
    assert jnp.allclose(attn, rattn, **TOL), "attention mismatch"
    assert jnp.allclose(ctx, rctx, **TOL), "context mismatch"

    # 2) dense bool mask (keep key 0 unmasked so no row is fully masked/NaN).
    mask = jax.random.bernoulli(km, p=0.25, shape=(B, Lq, Lk))
    mask = mask.at[:, :, 0].set(False)
    ctx_m, attn_m = scaled_dot_product_attention(q, k, v, scale=scale,
                                                 attn_mask=mask, q_tile=128)
    jax.block_until_ready((ctx_m, attn_m))
    rctx_m, rattn_m = _reference(q, k, v, scale=scale, attn_mask=mask)
    assert jnp.allclose(attn_m, rattn_m, **TOL), "masked attention mismatch"
    assert jnp.allclose(ctx_m, rctx_m, **TOL), "masked context mismatch"

    # 3) broadcastable (B, 1, Lk) bool mask -> resident per batch, not streamed.
    bmask = jax.random.bernoulli(km, p=0.25, shape=(B, 1, Lk))
    bmask = bmask.at[:, :, 0].set(False)
    ctx_b, attn_b = scaled_dot_product_attention(q, k, v, scale=scale,
                                                 attn_mask=bmask, q_tile=128)
    jax.block_until_ready((ctx_b, attn_b))
    rctx_b, rattn_b = _reference(q, k, v, scale=scale, attn_mask=bmask)
    assert jnp.allclose(attn_b, rattn_b, **TOL), "bcast-mask attention mismatch"
    assert jnp.allclose(ctx_b, rctx_b, **TOL), "bcast-mask context mismatch"

    # 4) ragged Lq (exercises pad + slice tail handling) and the
    #    context-only path that skips the (B, Lq, Lk) attention writeback.
    Lq2 = 200
    q2 = jax.random.normal(kq2, (B, Lq2, D), dtype=jnp.float32)
    ctx2 = scaled_dot_product_attention(q2, k, v, scale=scale, q_tile=128,
                                        return_attention=False)
    jax.block_until_ready(ctx2)
    rctx2, _ = _reference(q2, k, v, scale=scale)
    assert jnp.allclose(ctx2, rctx2, **TOL), "ragged context mismatch"

    print("KERNEL_OK")
</pallas_src>

<mosaic_0001>
module attributes {stable_mosaic.version = 11 : i64} {
  func.func @kernel(%arg0: i32, %arg1: i32, %arg2: memref<1x128x64xf32, #tpu.memory_space<vmem>>, %arg3: memref<1x128x64xf32, #tpu.memory_space<vmem>>, %arg4: memref<1x128x64xf32, #tpu.memory_space<vmem>>, %arg5: memref<1x128x64xf32, #tpu.memory_space<vmem>>, %arg6: memref<1x128x128xf32, #tpu.memory_space<vmem>>, %arg7: memref<128x64xbf16, #tpu.memory_space<vmem>>, %arg8: memref<128x64xbf16, #tpu.memory_space<vmem>>) attributes {dimension_semantics = [#tpu.dimension_semantics<parallel>, #tpu.dimension_semantics<arbitrary>], iteration_bounds = array<i64: 2, 2>, scalar_prefetch = 0 : i64, scratch_operands = 2 : i64, tpu.core_type = #tpu.core_type<tc>, window_params = [{transform_indices = @transform_0, window_bounds = array<i64: 1, 128, 64>}, {transform_indices = @transform_1, window_bounds = array<i64: 1, 128, 64>}, {transform_indices = @transform_2, window_bounds = array<i64: 1, 128, 64>}, {transform_indices = @transform_3, window_bounds = array<i64: 1, 128, 64>}, {transform_indices = @transform_4, window_bounds = array<i64: 1, 128, 128>}]} {
    %c0_i32 = arith.constant 0 : i32
    %0 = arith.cmpi eq, %arg1, %c0_i32 : i32
    %1 = arith.extui %0 : i1 to i32
    %c0_i32_0 = arith.constant 0 : i32
    %2 = arith.cmpi ne, %1, %c0_i32_0 : i32
    scf.if %2 {
      %c0_17 = arith.constant 0 : index
      %c0_18 = arith.constant 0 : index
      %c0_19 = arith.constant 0 : index
      %29 = vector.load %arg3[%c0_17, %c0_18, %c0_19] : memref<1x128x64xf32, #tpu.memory_space<vmem>>, vector<1x128x64xf32>
      %30 = vector.shape_cast %29 : vector<1x128x64xf32> to vector<128x64xf32>
      %31 = arith.truncf %30 : vector<128x64xf32> to vector<128x64xbf16>
      %c0_20 = arith.constant 0 : index
      %c0_21 = arith.constant 0 : index
      %32 = vector.load %arg7[%c0_20, %c0_21] : memref<128x64xbf16, #tpu.memory_space<vmem>>, vector<128x64xbf16>
      tpu.vector_store %arg7[%c0_20, %c0_21], %31 {strides = array<i32>} : memref<128x64xbf16, #tpu.memory_space<vmem>>, vector<128x64xbf16>,
      %c0_22 = arith.constant 0 : index
      %c0_23 = arith.constant 0 : index
      %c0_24 = arith.constant 0 : index
      %33 = vector.load %arg4[%c0_22, %c0_23, %c0_24] : memref<1x128x64xf32, #tpu.memory_space<vmem>>, vector<1x128x64xf32>
      %34 = vector.shape_cast %33 : vector<1x128x64xf32> to vector<128x64xf32>
      %35 = arith.truncf %34 : vector<128x64xf32> to vector<128x64xbf16>
      %c0_25 = arith.constant 0 : index
      %c0_26 = arith.constant 0 : index
      %36 = vector.load %arg8[%c0_25, %c0_26] : memref<128x64xbf16, #tpu.memory_space<vmem>>, vector<128x64xbf16>
      tpu.vector_store %arg8[%c0_25, %c0_26], %35 {strides = array<i32>} : memref<128x64xbf16, #tpu.memory_space<vmem>>, vector<128x64xbf16>,
    } else {
    }
    %c0 = arith.constant 0 : index
    %c0_1 = arith.constant 0 : index
    %c0_2 = arith.constant 0 : index
    %3 = vector.load %arg2[%c0, %c0_1, %c0_2] : memref<1x128x64xf32, #tpu.memory_space<vmem>>, vector<1x128x64xf32>
    %4 = vector.shape_cast %3 : vector<1x128x64xf32> to vector<128x64xf32>
    %cst = arith.constant 1.250000e-01 : f32
    %5 = vector.broadcast %cst : f32 to vector<128x64xf32>
    %6 = arith.mulf %4, %5 : vector<128x64xf32>
    %7 = arith.truncf %6 : vector<128x64xf32> to vector<128x64xbf16>
    %c0_3 = arith.constant 0 : index
    %c0_4 = arith.constant 0 : index
    %8 = vector.load %arg7[%c0_3, %c0_4] : memref<128x64xbf16, #tpu.memory_space<vmem>>, vector<128x64xbf16>
    %cst_5 = arith.constant dense<0.000000e+00> : vector<128x128xf32>
    %9 = tpu.matmul %7, %8, %cst_5 {dimension_numbers = #tpu.dot_dimension_numbers<[1], [1], [0], [0], [0, 0, 1, 0], [], []>} : vector<128x64xbf16>, vector<128x64xbf16>, vector<128x128xf32> -> vector<128x128xf32>
    %cst_6 = arith.constant dense<0xFF800000> : vector<128xf32>
    %10 = vector.multi_reduction <maximumf>, %9, %cst_6 [1] : vector<128x128xf32> to vector<128xf32>
    %11 = vector.shape_cast %10 : vector<128xf32> to vector<128x1xf32>
    %12 = vector.broadcast %11 : vector<128x1xf32> to vector<128x128xf32>
    %13 = arith.subf %9, %12 : vector<128x128xf32>
    %14 = math.exp %13 : vector<128x128xf32>
    %cst_7 = arith.constant dense<0.000000e+00> : vector<128xf32>
    %15 = vector.multi_reduction <add>, %14, %cst_7 [1] : vector<128x128xf32> to vector<128xf32>
    %16 = vector.shape_cast %15 : vector<128xf32> to vector<128x1xf32>
    %17 = tpu.reciprocal %16 {approx = true} : vector<128x1xf32> -> vector<128x1xf32>
    %18 = vector.broadcast %17 : vector<128x1xf32> to vector<128x128xf32>
    %19 = arith.mulf %14, %18 : vector<128x128xf32>
    %c0_8 = arith.constant 0 : index
    %c0_9 = arith.constant 0 : index
    %c0_10 = arith.constant 0 : index
    %20 = vector.load %arg6[%c0_8, %c0_9, %c0_10] : memref<1x128x128xf32, #tpu.memory_space<vmem>>, vector<1x128x128xf32>
    %21 = vector.shape_cast %20 : vector<1x128x128xf32> to vector<128x128xf32>
    %22 = vector.shape_cast %19 : vector<128x128xf32> to vector<1x128x128xf32>
    tpu.vector_store %arg6[%c0_8, %c0_9, %c0_10], %22 {strides = array<i32>} : memref<1x128x128xf32, #tpu.memory_space<vmem>>, vector<1x128x128xf32>,
    %23 = arith.truncf %19 : vector<128x128xf32> to vector<128x128xbf16>
    %c0_11 = arith.constant 0 : index
    %c0_12 = arith.constant 0 : index
    %24 = vector.load %arg8[%c0_11, %c0_12] : memref<128x64xbf16, #tpu.memory_space<vmem>>, vector<128x64xbf16>
    %cst_13 = arith.constant dense<0.000000e+00> : vector<128x64xf32>
    %25 = tpu.matmul %23, %24, %cst_13 {dimension_numbers = #tpu.dot_dimension_numbers<[1], [0], [0], [1], [0, 0, 1, 1], [], []>} : vector<128x128xbf16>, vector<128x64xbf16>, vector<128x64xf32> -> vector<128x64xf32>
    %c0_14 = arith.constant 0 : index
    %c0_15 = arith.constant 0 : index
    %c0_16 = arith.constant 0 : index
    %26 = vector.load %arg5[%c0_14, %c0_15, %c0_16] : memref<1x128x64xf32, #tpu.memory_space<vmem>>, vector<1x128x64xf32>
    %27 = vector.shape_cast %26 : vector<1x128x64xf32> to vector<128x64xf32>
    %28 = vector.shape_cast %25 : vector<128x64xf32> to vector<1x128x64xf32>
    tpu.vector_store %arg5[%c0_14, %c0_15, %c0_16], %28 {strides = array<i32>} : memref<1x128x64xf32, #tpu.memory_space<vmem>>, vector<1x128x64xf32>,
    return
  }
  func.func @transform_0(%arg0: i32, %arg1: i32) -> (i32, i32, i32) {
    %c0_i32 = arith.constant 0 : i32
    %c0_i32_0 = arith.constant 0 : i32
    return %arg0, %arg1, %c0_i32 : i32, i32, i32
  }
  func.func @transform_1(%arg0: i32, %arg1: i32) -> (i32, i32, i32) {
    %c0_i32 = arith.constant 0 : i32
    %c0_i32_0 = arith.constant 0 : i32
    %c0_i32_1 = arith.constant 0 : i32
    return %arg0, %c0_i32, %c0_i32_0 : i32, i32, i32
  }
  func.func @transform_2(%arg0: i32, %arg1: i32) -> (i32, i32, i32) {
    %c0_i32 = arith.constant 0 : i32
    %c0_i32_0 = arith.constant 0 : i32
    %c0_i32_1 = arith.constant 0 : i32
    return %arg0, %c0_i32, %c0_i32_0 : i32, i32, i32
  }
  func.func @transform_3(%arg0: i32, %arg1: i32) -> (i32, i32, i32) {
    %c0_i32 = arith.constant 0 : i32
    %c0_i32_0 = arith.constant 0 : i32
    return %arg0, %arg1, %c0_i32 : i32, i32, i32
  }
  func.func @transform_4(%arg0: i32, %arg1: i32) -> (i32, i32, i32) {
    %c0_i32 = arith.constant 0 : i32
    %c0_i32_0 = arith.constant 0 : i32
    return %arg0, %arg1, %c0_i32 : i32, i32, i32
  }
}

</mosaic_0001>

<bundles_post_ra>
// kernel: tpu_custom_call.1
= control target key start
LH: loop header
LB: loop body
LE: loop exit
PB: predicated region body
PF: predicated region fallthrough
CT: control target
= control target key end

     0   :  { %10 = vsyncpa [#allocation5], 0  ;;  %s1814_s0 = inlined_call_operand.vmem [shape: f32[2,256,64], index: 0, kind: input, shape index: {}]   ;;  %s1815_s1 = inlined_call_operand.vmem [shape: f32[2,128,64], index: 1, kind: input, shape index: {}]   ;;  %s1816_s2 = inlined_call_operand.vmem [shape: f32[2,128,64], index: 2, kind: input, shape index: {}]   ;;  %s1817_s3 = inlined_call_operand.vmem [shape: f32[2,256,64], index: 3, kind: output, shape index: {0}]   ;;  %s1818_s4 = inlined_call_operand.hbm [shape: f32[2,256,128], index: 4, kind: output, shape index: {1}]  }
   0x1   :  { %12 = vsyncpa [#allocation5 + $0x1], 0  ;;  %s1414_s15 = smov 0   ;;  %s1416_s16 = smov 0  }
   0x2   :  { %s1418_s17 = smov 0   ;;  %s1420_s18 = smov 0  }
   0x3   :  { %s1422_s19 = smov 0   ;;  %s1424_s20 = smov 0  }
   0x4   :  { %s1426_s21 = smov 0   ;;  %s1428_s22 = smov 0  }
   0x5 LB: > { %1825 = sst [smem:[#allocation7_spill]] %s1364_s17  ;;  %s1016_s23 = sadd.s32 4294967295, %s1384_s22   ;;  %s1384_s22 = sphi %s1428_s22, %s18_s22   ;;  %s1380_s21 = sphi %s1426_s21, %s1839_s21   ;;  %s1376_s20 = sphi %s1424_s20, %s1842_s20   ;;  %s1372_s19 = sphi %s1422_s19, %s1837_s19   ;;  %s1368_s18 = sphi %s1420_s18, %s1836_s18   ;;  %s1364_s17 = sphi %s1418_s17, %s1835_s17   ;;  %s1360_s16 = sphi %s1416_s16, %s1841_s16   ;;  %s1356_s15 = sphi %s1414_s15, %s1840_s15  }
   0x6   : > { %1826 = sst [smem:[#allocation8_spill]] %s1376_s20  ;;  %s1017_s24 = sadd.s32 4294967294, %s1384_s22  }
   0x7   : > { %1827 = sst [smem:[#allocation9_spill]] %s1380_s21  ;;  %s27_s25 = sadd.s32 1, %s1376_s20 }
   0x8   : > { %p28_p0 = scmp.ge.s32.totalorder %s27_s25, 2  ;;  %s30_s26 = sadd.s32 1, %s1380_s21 }
   0x9   : > { %p157_p1 = scmp.ne.s32.totalorder %s1364_s17, %s1360_s16  ;;  %p158_p2 = scmp.eq.s32.totalorder %s1016_s23, 3 }
   0xa   : > { %s1844_s25 = smov (%p28_p0, %s27_s25), 0  ;;  %s1846_s26 = smov (!%p28_p0, %s30_s26), %s1380_s21 }
   0xb   : > { %1828 = sst [smem:[#allocation10_spill]] %s1844_s25  ;;  %s143_s27 = ssub.s32 %s1376_s20, %s1844_s25 }
   0xc   : > { %p1465_p3 = por %p158_p2, %p157_p1  ;;  %p32_p4 = scmp.ge.s32.totalorder %s1846_s26, 2 }
   0xd   : > { %p163_p5 = scmp.ne.s32.totalorder %s1360_s16, %s1356_s15  ;;  %p164_p6 = scmp.eq.s32.totalorder %s1017_s24, 3 }
   0xe   : > { %p1020_p7 = scmp.ge.s32.totalorder %s1384_s22, 1  ;;  %s1848_s26 = smov (%p32_p4, %s1846_s26), 0 }
   0xf   : > { %1830 = sst [smem:[#allocation11_spill]] %s1848_s26  ;;  %p1474_p8 = por %p164_p6, %p163_p5 }
  0x10   : > { %p211_p9 = scmp.lt.s32.totalorder %s1384_s22, 5  ;;  %s142_s30 = ssub.s32 %s1380_s21, %s1848_s26 }
  0x11   : > { %s147_s5 = sadd.s32 1, %s1364_s17  ;;  %s144_s6 = sor.u32 %s143_s27, %s142_s30 }
  0x12   : > { %p212_p10 = pnand %p1020_p7, %p211_p9  ;;  %p145_p11 = scmp.eq.s32.totalorder %s144_s6, 0 }
  0x13   : > { %s1822_s8 = sand.u32 (!%p212_p10), 1, %s1360_s16   ;;  %s1487_s9 = sshll.u32 (!%p212_p10), %s1368_s18, 4 }
  0x14   : > { %s1483_s7 = scalar_select %p145_p11, %s1364_s17, %s147_s5  }
  0x15   : > { %215 = sbr.rel (%p212_p10) target bundleno = 889 (0x379), region = 32  ;;  %s1021_s10 = sshll.u32 (!%p212_p10), %s1822_s8, 7 }
  0x16   : > { %1832 = sst [smem:[#allocation12_spill]] %s1483_s7  ;;  %p261_p12 = scmp.lt.s32.totalorder (!%p212_p10), %s1372_s19, 1 }
  0x17   : > { %p263_p13 = scmp.lt.s32.totalorder (!%p212_p10), %s1487_s9, 31  ;;  %p1032_p0 = scmp.ne.s32.totalorder (!%p212_p10), %s1368_s18, 0 }
  0x1c   : > { %s262_s11 = scalar_select %p261_p12, %s1372_s19, 1 }
  0x1d   : > { %s264_s12 = scalar_select %p263_p13, %s1487_s9, 31 }
  0x1e   : > { %s1023_s13 = sshll.u32 %s262_s11, 5  ;;  %s1047_s14 = sshll.u32 %s262_s11, 7  ;;  %vm320_vm0 = vcmask (!%p1032_p0), 523264  }
  0x1f   : > { %s266_s23 = sadd.s32 %s1023_s13, %s264_s12  ;;  %s1498_s30 = scalar_lea.vmem %s1815_s1, %s1047_s14 }
  0x20   : > { %s1024_s5 = sshll.u32 %s266_s23, 3  ;;  %s1503_s25 = scalar_lea.vmem %s1816_s2, %s1047_s14  ;;  %v296_v0 = vld [vmem:[%s1498_s30] sm:$0xff] (!%p1032_p0)  ;;  %v297_v1 = vld [vmem:[%s1498_s30 + $0x8] sm:$0xff] (!%p1032_p0)  ;;  %v298_v2 = vld [vmem:[%s1498_s30 + $0x10] sm:$0xff] (!%p1032_p0) }
  0x21   : > { %s1508_s20 = scalar_lea.vmem %s1814_s0, %s1024_s5  ;;  %s1513_s11 = scalar_lea.vmem %s1817_s3, %s1024_s5  ;;  %v312_v3 = vpack.c.bf16 (!%p1032_p0), %v297_v1, %v296_v0  ;;  %v299_v4 = vld [vmem:[%s1498_s30 + $0x18] sm:$0xff] (!%p1032_p0)  ;;  %v300_v5 = vld [vmem:[%s1498_s30 + $0x20] sm:$0xff] (!%p1032_p0)  ;;  %v301_v6 = vld [vmem:[%s1498_s30 + $0x28] sm:$0xff] (!%p1032_p0) }
  0x22   : > { %s1515_s12 = scalar_lea.vmem [#allocation4], %s1021_s10  ;;  %295 = sbr.rel (%p1032_p0) target bundleno = 47 (0x2f), region = 36  ;;  %v313_v7 = vpack.c.bf16 (!%p1032_p0), %v299_v4, %v298_v2  ;;  %v314_v8 = vpack.c.bf16 (!%p1032_p0), %v301_v6, %v300_v5  ;;  %v302_v9 = vld [vmem:[%s1498_s30 + $0x30] sm:$0xff] (!%p1032_p0)  ;;  %v303_v10 = vld [vmem:[%s1498_s30 + $0x38] sm:$0xff] (!%p1032_p0)  ;;  %v304_v11 = vld [vmem:[%s1498_s30 + $0x40] sm:$0xff] (!%p1032_p0) }
  0x23   : > { %321 = vst.msk [vmem:[#allocation2] sm:$0xff] (!%p1032_p0), %vm320_vm0, %v312_v3  ;;  %v315_v12 = vpack.c.bf16 (!%p1032_p0), %v303_v10, %v302_v9  ;;  %v305_v13 = vld [vmem:[%s1498_s30 + $0x48] sm:$0xff] (!%p1032_p0)  ;;  %v306_v14 = vld [vmem:[%s1498_s30 + $0x50] sm:$0xff] (!%p1032_p0)  ;;  %v307_v15 = vld [vmem:[%s1498_s30 + $0x58] sm:$0xff] (!%p1032_p0) }
  0x24   : > { %322 = vst.msk [vmem:[#allocation2 + $0x8] sm:$0xff] (!%p1032_p0), %vm320_vm0, %v313_v7  ;;  %323 = vst.msk [vmem:[#allocation2 + $0x10] sm:$0xff] (!%p1032_p0), %vm320_vm0, %v314_v8  ;;  %v316_v16 = vpack.c.bf16 (!%p1032_p0), %v305_v13, %v304_v11  ;;  %v317_v17 = vpack.c.bf16 (!%p1032_p0), %v307_v15, %v306_v14  ;;  %v308_v18 = vld [vmem:[%s1498_s30 + $0x60] sm:$0xff] (!%p1032_p0)  ;;  %v309_v19 = vld [vmem:[%s1498_s30 + $0x68] sm:$0xff] (!%p1032_p0) }
  0x25   : > { %v310_v20 = vld [vmem:[%s1498_s30 + $0x70] sm:$0xff] (!%p1032_p0)  ;;  %324 = vst.msk [vmem:[#allocation2 + $0x18] sm:$0xff] (!%p1032_p0), %vm320_vm0, %v315_v12  ;;  %v318_v21 = vpack.c.bf16 (!%p1032_p0), %v309_v19, %v308_v18  ;;  %v311_v22 = vld [vmem:[%s1498_s30 + $0x78] sm:$0xff] (!%p1032_p0)  ;;  %v329_v23 = vld [vmem:[%s1503_s25] sm:$0xff] (!%p1032_p0) }
  0x26   : > { %v330_v24 = vld [vmem:[%s1503_s25 + $0x8] sm:$0xff] (!%p1032_p0)  ;;  %325 = vst.msk [vmem:[#allocation2 + $0x20] sm:$0xff] (!%p1032_p0), %vm320_vm0, %v316_v16  ;;  %326 = vst.msk [vmem:[#allocation2 + $0x28] sm:$0xff] (!%p1032_p0), %vm320_vm0, %v317_v17  ;;  %v319_v25 = vpack.c.bf16 (!%p1032_p0), %v311_v22, %v310_v20  ;;  %v331_v27 = vld [vmem:[%s1503_s25 + $0x10] sm:$0xff] (!%p1032_p0) }
  0x27   : > { %v345_v26 = vpack.c.bf16 (!%p1032_p0), %v330_v24, %v329_v23  ;;  %v332_v28 = vld [vmem:[%s1503_s25 + $0x18] sm:$0xff] (!%p1032_p0)  ;;  %v333_v29 = vld [vmem:[%s1503_s25 + $0x20] sm:$0xff] (!%p1032_p0)  ;;  %327 = vst.msk [vmem:[#allocation2 + $0x30] sm:$0xff] (!%p1032_p0), %vm320_vm0, %v318_v21  ;;  %v334_v31 = vld [vmem:[%s1503_s25 + $0x28] sm:$0xff] (!%p1032_p0) }
  0x28   : > { %v346_v30 = vpack.c.bf16 (!%p1032_p0), %v332_v28, %v331_v27  ;;  %v335_v32 = vld [vmem:[%s1503_s25 + $0x30] sm:$0xff] (!%p1032_p0)  ;;  %v336_v33 = vld [vmem:[%s1503_s25 + $0x38] sm:$0xff] (!%p1032_p0)  ;;  %328 = vst.msk [vmem:[#allocation2 + $0x38] sm:$0xff] (!%p1032_p0), %vm320_vm0, %v319_v25  ;;  %v347_v34 = vpack.c.bf16 (!%p1032_p0), %v334_v31, %v333_v29  ;;  %v337_v36 = vld [vmem:[%s1503_s25 + $0x40] sm:$0xff] (!%p1032_p0) }
  0x29   : > { %353 = vst.msk [vmem:[#allocation3] sm:$0xff] %vm320_vm0, %v345_v26  ;;  %v348_v35 = vpack.c.bf16 %v336_v33, %v335_v32  ;;  %v338_v37 = vld [vmem:[%s1503_s25 + $0x48] sm:$0xff]  ;;  %v339_v38 = vld [vmem:[%s1503_s25 + $0x50] sm:$0xff]  ;;  %v340_v40 = vld [vmem:[%s1503_s25 + $0x58] sm:$0xff] }
  0x2a   : > { %354 = vst.msk [vmem:[#allocation3 + $0x8] sm:$0xff] %vm320_vm0, %v346_v30  ;;  %v349_v39 = vpack.c.bf16 %v338_v37, %v337_v36  ;;  %v341_v41 = vld [vmem:[%s1503_s25 + $0x60] sm:$0xff]  ;;  %v342_v42 = vld [vmem:[%s1503_s25 + $0x68] sm:$0xff]  ;;  %355 = vst.msk [vmem:[#allocation3 + $0x10] sm:$0xff] %vm320_vm0, %v347_v34  ;;  %v350_v43 = vpack.c.bf16 %v340_v40, %v339_v38 }
  0x2b   : > { %356 = vst.msk [vmem:[#allocation3 + $0x18] sm:$0xff] %vm320_vm0, %v348_v35  ;;  %v351_v44 = vpack.c.bf16 %v342_v42, %v341_v41  ;;  %v343_v45 = vld [vmem:[%s1503_s25 + $0x70] sm:$0xff]  ;;  %v344_v46 = vld [vmem:[%s1503_s25 + $0x78] sm:$0xff] }
  0x2c   : > { %357 = vst.msk [vmem:[#allocation3 + $0x20] sm:$0xff] %vm320_vm0, %v349_v39  ;;  %v352_v47 = vpack.c.bf16 %v344_v46, %v343_v45  ;;  %358 = vst.msk [vmem:[#allocation3 + $0x28] sm:$0xff] %vm320_vm0, %v350_v43 }
  0x2d   : > { %359 = vst.msk [vmem:[#allocation3 + $0x30] sm:$0xff] %vm320_vm0, %v351_v44 }
  0x2e   : > { %360 = vst.msk [vmem:[#allocation3 + $0x38] sm:$0xff] %vm320_vm0, %v352_v47 }
  0x2f PF: > { %vm409_vm1 = vcmask 523264   ;;  %v361_v51 = vld [vmem:[%s1508_s20] sm:$0xff]  ;;  %v362_v52 = vld [vmem:[%s1508_s20 + $0x8] sm:$0xff]  ;;  %v363_v4 = vld [vmem:[%s1508_s20 + $0x10] sm:$0xff]  ;;  %s1043_s17 = sshll.u32 %s1372_s19, 5  ;;  %s873_s21 = sshll.u32 %s1515_s12, 4  ;;  %s1726_s21 = int_to_ptr.vmem [resolvable:$true] %s873_s21 }
  0x30   : > { %v401_v48 = vld [vmem:[#allocation2] sm:$0xff]  ;;  %v377_v53 = vmul.f32 0.125, %v361_v51  ;;  %v378_v54 = vmul.f32 0.125, %v362_v52  ;;  %v364_v5 = vld [vmem:[%s1508_s20 + $0x18] sm:$0xff]  ;;  %v366_v8 = vld [vmem:[%s1508_s20 + $0x28] sm:$0xff]  ;;  %v379_v9 = vmul.f32 0.125, %v363_v4  ;;  %s870_s18 = sadd.s32 %s1043_s17, %s1487_s9 }
  0x31   : > { %v402_v49 = vld [vmem:[#allocation2 + $0x8] sm:$0xff]  ;;  %1145 = vmatprep.subr.msk.bf16.mxu0 %vm409_vm1, %v401_v48  ;;  %v435_v50 = vsel %vm409_vm1, %v401_v48, 0  ;;  %v403_v57 = vld [vmem:[#allocation2 + $0x10] sm:$0xff]  ;;  %v365_v7 = vld [vmem:[%s1508_s20 + $0x20] sm:$0xff]  ;;  %v380_v10 = vmul.f32 0.125, %v364_v5  ;;  %v382_v12 = vmul.f32 0.125, %v366_v8 }
  0x32   : > { %1082 = vmatpush3.bf16.xpose.msra.mxu0 %v435_v50  ;;  %v393_v55 = vpack.c.bf16 %v378_v54, %v377_v53  ;;  %v438_v56 = vsel %vm409_vm1, %v402_v49, 0  ;;  %v441_v58 = vsel %vm409_vm1, %v403_v57, 0  ;;  %v404_v59 = vld [vmem:[#allocation2 + $0x18] sm:$0xff]  ;;  %v381_v11 = vmul.f32 0.125, %v365_v7  ;;  %v367_v15 = vld [vmem:[%s1508_s20 + $0x30] sm:$0xff]  ;;  %v369_v17 = vld [vmem:[%s1508_s20 + $0x40] sm:$0xff] }
  0x33   : > { %1146 = vmatprep.subr.msk.bf16.mxu0 %vm409_vm1, %v402_v49  ;;  %v444_v60 = vsel %vm409_vm1, %v404_v59, 0  ;;  %v405_v61 = vld [vmem:[#allocation2 + $0x20] sm:$0xff]  ;;  %v406_v63 = vld [vmem:[#allocation2 + $0x28] sm:$0xff]  ;;  %v394_v13 = vpack.c.bf16 %v380_v10, %v379_v9  ;;  %v368_v16 = vld [vmem:[%s1508_s20 + $0x38] sm:$0xff]  ;;  %v383_v19 = vmul.f32 0.125, %v367_v15  ;;  %v385_v21 = vmul.f32 0.125, %v369_v17 }
  0x34   : > { %1097 = vmatprep.mubr.msk.bf16.mxu0 %vm409_vm1, %v393_v55  ;;  %v447_v62 = vsel %vm409_vm1, %v405_v61, 0  ;;  %v450_v0 = vsel %vm409_vm1, %v406_v63, 0  ;;  %v407_v1 = vld [vmem:[#allocation2 + $0x30] sm:$0xff]  ;;  %v395_v14 = vpack.c.bf16 %v382_v12, %v381_v11  ;;  %v370_v18 = vld [vmem:[%s1508_s20 + $0x48] sm:$0xff]  ;;  %v384_v20 = vmul.f32 0.125, %v368_v16  ;;  %v372_v26 = vld [vmem:[%s1508_s20 + $0x58] sm:$0xff] }
  0x35   : > { %v453_v2 = vsel %vm409_vm1, %v407_v1, 0  ;;  %v408_v3 = vld [vmem:[#allocation2 + $0x38] sm:$0xff]  ;;  %v386_v22 = vmul.f32 0.125, %v370_v18  ;;  %v371_v25 = vld [vmem:[%s1508_s20 + $0x50] sm:$0xff]  ;;  %v373_v27 = vld [vmem:[%s1508_s20 + $0x60] sm:$0xff]  ;;  %v388_v30 = vmul.f32 0.125, %v372_v26 }
  0x36   : > { %v456_v6 = vsel %vm409_vm1, %v408_v3, 0  ;;  %v396_v23 = vpack.c.bf16 %v384_v20, %v383_v19  ;;  %v374_v28 = vld [vmem:[%s1508_s20 + $0x68] sm:$0xff]  ;;  %v387_v29 = vmul.f32 0.125, %v371_v25  ;;  %v389_v31 = vmul.f32 0.125, %v373_v27  ;;  %v375_v35 = vld [vmem:[%s1508_s20 + $0x70] sm:$0xff]  ;;  %v376_v36 = vld [vmem:[%s1508_s20 + $0x78] sm:$0xff] }
  0x37   : > { %v397_v24 = vpack.c.bf16 %v386_v22, %v385_v21  ;;  %v390_v32 = vmul.f32 0.125, %v374_v28  ;;  %v391_v37 = vmul.f32 0.125, %v375_v35  ;;  %v392_v38 = vmul.f32 0.125, %v376_v36  ;;  %s1044_s20 = sshll.u32 %s870_s18, 7  ;;  %s1833_s8 = sand.u32 1, %s1360_s16  }
  0x38   : > { %v398_v33 = vpack.c.bf16 %v388_v30, %v387_v29  ;;  %s1724_s7 = scalar_lea.hbm %s1818_s4, %s1044_s20  ;;  %s1730_s10 = scalar_lea.sflag [#allocation5], %s1833_s8 }
  0x39   : > { %v399_v34 = vpack.c.bf16 %v390_v32, %v389_v31  ;;  %v400_v39 = vpack.c.bf16 %v392_v38, %v391_v37  ;;  %s1290_s13 = scalar_lea.vmem %s1726_s21, 2048  ;;  %s1386_s19 = smov [#allocation4]  }
  0x3a   : > { %1084 = vmatpush3.bf16.xpose.msra.mxu0 %v438_v56  ;;  %v723_v56 = vld [vmem:[#allocation3] sm:$0xff]  ;;  %p1291_p1 = scmp.ne.s32.totalorder %s1726_s21, %s1290_s13  ;;  %s1294_s9 = sshll.u32 %s1386_s19, 4  ;;  %s1295_s9 = int_to_ptr.vmem [resolvable:$false] %s1294_s9 }
  0x3b   : > { %1147 = vmatprep.subr.msk.bf16.mxu0 %vm409_vm1, %v403_v57  ;;  %v724_v57 = vld [vmem:[#allocation3 + $0x8] sm:$0xff]  ;;  %1113 = vmatprep.subr.bf16.mxu1 %v723_v56  ;;  %s1296_s14 = scalar_lea.vmem %s1295_s9, 4096  ;;  %p1297_p5 = scmp.lt.s32.totalorder %s1726_s21, %s1295_s9 }
  0x3c   : > { %1114 = vmatpush3.bf16.msra.mxu1 %v723_v56  ;;  %v727_v56 = vld [vmem:[#allocation3 + $0x20] sm:$0xff]  ;;  %p1292_p2 = pnand %p1291_p1, %p1465_p3  ;;  %p1298_p6 = scmp.lt.s32.totalorder %s1296_s14, %s1290_s13 }
  0x3d   : > { %1115 = vmatprep.subr.bf16.mxu1 %v724_v57 }
  0x3e   : > { %p1293_p4 = pneg %p1292_p2  ;;  %p1299_p7 = por %p1298_p6, %p1297_p5 }
  0x40   : > { %1116 = vmatpush3.bf16.msra.mxu1 %v724_v57  ;;  %p1300_p9 = pnand %p1299_p7, %p1293_p4 }
  0x42   : > { %1086 = vmatpush3.bf16.xpose.msra.mxu0 %v441_v58  ;;  %v725_v58 = vld [vmem:[#allocation3 + $0x10] sm:$0xff] }
  0x43   : > { %1148 = vmatprep.subr.msk.bf16.mxu0 %vm409_vm1, %v404_v59  ;;  %1117 = vmatprep.subr.bf16.mxu1 %v725_v58 }
  0x44   : > { %1118 = vmatpush3.bf16.msra.mxu1 %v725_v58  ;;  %v728_v58 = vld [vmem:[#allocation3 + $0x28] sm:$0xff] }
  0x4a   : > { %1088 = vmatpush3.bf16.xpose.msra.mxu0 %v444_v60 }
  0x4b   : > { %1149 = vmatprep.subr.msk.bf16.mxu0 %vm409_vm1, %v405_v61 }
  0x52   : > { %1090 = vmatpush3.bf16.xpose.msra.mxu0 %v447_v62 }
  0x53   : > { %1150 = vmatprep.subr.msk.bf16.mxu0 %vm409_vm1, %v406_v63 }
  0x5a   : > { %1092 = vmatpush3.bf16.xpose.msra.mxu0 %v450_v0 }
  0x5b   : > { %1151 = vmatprep.subr.msk.bf16.mxu0 %vm409_vm1, %v407_v1 }
  0x62   : > { %1094 = vmatpush3.bf16.xpose.msra.mxu0 %v453_v2 }
  0x63   : > { %1152 = vmatprep.subr.msk.bf16.mxu0 %vm409_vm1, %v408_v3 }
  0x6a   : > { %1096 = vmatpush3.bf16.xpose.msra.mxu0 %v456_v6 }
  0x71   : > { %1098 = vmatmul.mubr.msk.bf16.vlgmr.msra.gmra.mrb[0].mxu0 %vm409_vm1, %v394_v13 }
  0x72   : > { %1101 = vmatprep.mubr.msk.bf16.mxu0 %vm409_vm1, %v395_v14 }
  0x79   : > { %1102 = vmatmul.mubr.msk.bf16.gmra.mrb[4].mxu0 %vm409_vm1, %v396_v23 }
  0x7a   : > { %1105 = vmatprep.mubr.msk.bf16.mxu0 %vm409_vm1, %v397_v24 }
  0x81   : > { %1106 = vmatmul.mubr.msk.bf16.gmra.mrb[8].mxu0 %vm409_vm1, %v398_v33 }
  0x82   : > { %1109 = vmatprep.mubr.msk.bf16.mxu0 %vm409_vm1, %v399_v34 }
  0x89   : > { %1110 = vmatmul.mubr.msk.bf16.gmra.mrb[12].mxu0 %vm409_vm1, %v400_v39 }
 0x144   : > { %v1099_v40 = vpop.f32.mrb[0].mxu0 }
 0x145   : > { %559 = vmax.xlane.f32.xlu1 %v1099_v40  ;;  %v492_v41 = vpop.f32.mrb[1].mxu0 }
 0x146   : > { %555 = vmax.xlane.f32.xlu0 %v492_v41  ;;  %v1100_v42 = vpop.f32.mrb[2].mxu0 }
 0x147   : > { %v495_v43 = vpop.f32.mrb[3].mxu0 }
 0x149   : > { %561 = vmax.xlane.f32.xlu1 %v1100_v42 }
 0x14a   : > { %557 = vmax.xlane.f32.xlu0 %v495_v43 }
 0x14c   : > { %v1103_v44 = vpop.f32.mrb[4].mxu0 }
 0x14d   : > { %v508_v45 = vpop.f32.mrb[5].mxu0 }
 0x14e   : > { %563 = vmax.xlane.f32.xlu0 %v508_v45  ;;  %v1606_v46 = vpop.f32.mrb[6].mxu0 }
 0x14f   : > { %v511_v47 = vpop.f32.mrb[7].mxu0 }
 0x150   : > { %565 = vmax.xlane.f32.xlu1 %v511_v47 }
 0x152   : > { %567 = vmax.xlane.f32.xlu0 %v1103_v44 }
 0x154   : > { %569 = vmax.xlane.f32.xlu1 %v1606_v46  ;;  %v1609_v48 = vpop.f32.mrb[8].mxu0 }
 0x155   : > { %v524_v49 = vpop.f32.mrb[9].mxu0 }
 0x156   : > { %571 = vmax.xlane.f32.xlu0 %v524_v49  ;;  %v1611_v50 = vpop.f32.mrb[10].mxu0 }
 0x157   : > { %v1613_v51 = vpop.f32.mrb[11].mxu0 }
 0x158   : > { %573 = vmax.xlane.f32.xlu1 %v1613_v51 }
 0x15a   : > { %575 = vmax.xlane.f32.xlu0 %v1609_v48 }
 0x15c   : > { %577 = vmax.xlane.f32.xlu1 %v1611_v50  ;;  %v1618_v52 = vpop.f32.mrb[12].mxu0 }
 0x15d   : > { %v1620_v53 = vpop.f32.mrb[13].mxu0 }
 0x15e   : > { %579 = vmax.xlane.f32.xlu0 %v1620_v53  ;;  %v1623_v54 = vpop.f32.mrb[14].mxu0 }
 0x15f   : > { %v1625_v55 = vpop.f32.mrb[15].mxu0 }
 0x160   : > { %581 = vmax.xlane.f32.xlu1 %v1625_v55 }
 0x162   : > { %583 = vmax.xlane.f32.xlu0 %v1618_v52 }
 0x164   : > { %585 = vmax.xlane.f32.xlu1 %v1623_v54 }
 0x1d2   : > { %v560_v59 = vpop.xlane.xlu1 %559 }
 0x1d3   : > { %v589_v60 = vsub.f32 %v1099_v40, %v560_v59  ;;  %v556_v61 = vpop.xlane.xlu0 %555 }
 0x1d4   : > { %v587_v62 = vsub.f32 %v492_v41, %v556_v61  ;;  %v729_v61 = vld [vmem:[#allocation3 + $0x30] sm:$0xff] }
 0x1d5   : > { %v607_v1 = vmul.f32 1.442695, %v589_v60 }
 0x1d6   : > { %v603_v63 = vmul.f32 1.442695, %v587_v62  ;;  %v562_v0 = vpop.xlane.xlu1 %561 }
 0x1d7   : > { %v590_v2 = vsub.f32 %v1100_v42, %v562_v0  ;;  %v558_v3 = vpop.xlane.xlu0 %557 }
 0x1d8   : > { %1226 = vpow2.f32 %v603_v63  ;;  %v588_v4 = vsub.f32 %v495_v43, %v558_v3  ;;  %v730_v63 = vld [vmem:[#allocation3 + $0x38] sm:$0xff] }
 0x1d9   : > { %1228 = vpow2.f32 %v607_v1  ;;  %v609_v6 = vmul.f32 1.442695, %v590_v2 }
 0x1da   : > { %v605_v5 = vmul.f32 1.442695, %v588_v4 }
 0x1db   : > { %v564_v7 = vpop.xlane.xlu0 %563 }
 0x1dc   : > { %1230 = vpow2.f32 %v605_v5  ;;  %v591_v8 = vsub.f32 %v508_v45, %v564_v7 }
 0x1dd   : > { %v566_v9 = vpop.xlane.xlu1 %565  ;;  %1232 = vpow2.f32 %v609_v6 }
 0x1de   : > { %v611_v10 = vmul.f32 1.442695, %v591_v8  ;;  %v592_v11 = vsub.f32 %v511_v47, %v566_v9 }
 0x1df   : > { %v568_v12 = vpop.xlane.xlu0 %567 }
 0x1e0   : > { %1234 = vpow2.f32 %v611_v10  ;;  %v613_v13 = vmul.f32 1.442695, %v592_v11  ;;  %v593_v14 = vsub.f32 %v1103_v44, %v568_v12 }
 0x1e1   : > { %v570_v15 = vpop.xlane.xlu1 %569 }
 0x1e2   : > { %v1630_v16 = vpop.eup %1226  ;;  %v615_v17 = vmul.f32 1.442695, %v593_v14  ;;  %v594_v18 = vsub.f32 %v1606_v46, %v570_v15  ;;  %1236 = vpow2.f32 %v613_v13 }
 0x1e3   : > { %v572_v19 = vpop.xlane.xlu0 %571  ;;  %635 = vadd.xlane.f32.xlu0 %v1630_v16  ;;  %v1634_v22 = vpop.eup %1228 }
 0x1e4   : > { %1238 = vpow2.f32 %v615_v17  ;;  %v617_v20 = vmul.f32 1.442695, %v594_v18  ;;  %v595_v21 = vsub.f32 %v524_v49, %v572_v19 }
 0x1e5   : > { %v574_v23 = vpop.xlane.xlu1 %573 }
 0x1e6   : > { %v1636_v24 = vpop.eup %1230  ;;  %v619_v25 = vmul.f32 1.442695, %v595_v21  ;;  %v596_v26 = vsub.f32 %v1613_v51, %v574_v23  ;;  %1240 = vpow2.f32 %v617_v20 }
 0x1e7   : > { %v576_v27 = vpop.xlane.xlu0 %575  ;;  %639 = vadd.xlane.f32.xlu0 %v1634_v22  ;;  %637 = vadd.xlane.f32.xlu1 %v1636_v24  ;;  %v1642_v30 = vpop.eup %1232 }
 0x1e8   : > { %1242 = vpow2.f32 %v619_v25  ;;  %v621_v28 = vmul.f32 1.442695, %v596_v26  ;;  %v597_v29 = vsub.f32 %v1609_v48, %v576_v27  ;;  %v726_v48 = vld [vmem:[#allocation3 + $0x18] sm:$0xff] }
 0x1e9   : > { %v578_v31 = vpop.xlane.xlu1 %577  ;;  %1119 = vmatprep.subr.bf16.mxu1 %v726_v48 }
 0x1ea   : > { %v1644_v32 = vpop.eup %1234  ;;  %v623_v33 = vmul.f32 1.442695, %v597_v29  ;;  %v598_v34 = vsub.f32 %v1611_v50, %v578_v31  ;;  %1244 = vpow2.f32 %v621_v28  ;;  %1120 = vmatpush3.bf16.msra.mxu1 %v726_v48 }
 0x1eb   : > { %643 = vadd.xlane.f32.xlu0 %v1644_v32  ;;  %v580_v35 = vpop.xlane.xlu0 %579  ;;  %641 = vadd.xlane.f32.xlu1 %v1642_v30 }
 0x1ec   : > { %1246 = vpow2.f32 %v623_v33  ;;  %v625_v36 = vmul.f32 1.442695, %v598_v34  ;;  %v599_v37 = vsub.f32 %v1620_v53, %v580_v35  ;;  %v1650_v38 = vpop.eup %1236  ;;  %1121 = vmatprep.subr.bf16.mxu1 %v727_v56 }
 0x1ed   : > { %v582_v39 = vpop.xlane.xlu1 %581 }
 0x1ee   : > { %v1652_v40 = vpop.eup %1238  ;;  %v627_v41 = vmul.f32 1.442695, %v599_v37  ;;  %v600_v42 = vsub.f32 %v1625_v55, %v582_v39  ;;  %1248 = vpow2.f32 %v625_v36  ;;  %1122 = vmatpush3.bf16.msra.mxu1 %v727_v56 }
 0x1ef   : > { %647 = vadd.xlane.f32.xlu0 %v1652_v40  ;;  %v584_v43 = vpop.xlane.xlu0 %583  ;;  %645 = vadd.xlane.f32.xlu1 %v1650_v38 }
 0x1f0   : > { %1250 = vpow2.f32 %v627_v41  ;;  %v629_v44 = vmul.f32 1.442695, %v600_v42  ;;  %v601_v45 = vsub.f32 %v1618_v52, %v584_v43  ;;  %v1658_v46 = vpop.eup %1240  ;;  %1123 = vmatprep.subr.bf16.mxu1 %v728_v58 }
 0x1f1   : > { %v586_v47 = vpop.xlane.xlu1 %585 }
 0x1f2   : > { %v1660_v49 = vpop.eup %1242  ;;  %v631_v50 = vmul.f32 1.442695, %v601_v45  ;;  %v602_v51 = vsub.f32 %v1623_v54, %v586_v47  ;;  %1252 = vpow2.f32 %v629_v44  ;;  %1124 = vmatpush3.bf16.msra.mxu1 %v728_v58 }
 0x1f3   : > { %651 = vadd.xlane.f32.xlu0 %v1660_v49  ;;  %649 = vadd.xlane.f32.xlu1 %v1658_v46 }
 0x1f4   : > { %1254 = vpow2.f32 %v631_v50  ;;  %v633_v53 = vmul.f32 1.442695, %v602_v51  ;;  %v1665_v55 = vpop.eup %1244  ;;  %1125 = vmatprep.subr.bf16.mxu1 %v729_v61 }
 0x1f6   : > { %v1667_v52 = vpop.eup %1246  ;;  %1256 = vpow2.f32 %v633_v53  ;;  %1126 = vmatpush3.bf16.msra.mxu1 %v729_v61 }
 0x1f7   : > { %655 = vadd.xlane.f32.xlu0 %v1667_v52  ;;  %653 = vadd.xlane.f32.xlu1 %v1665_v55 }
 0x1f8   : > { %v1671_v54 = vpop.eup %1248  ;;  %1127 = vmatprep.subr.bf16.mxu1 %v730_v63 }
 0x1fa   : > { %v1673_v57 = vpop.eup %1250  ;;  %1128 = vmatpush3.bf16.msra.mxu1 %v730_v63 }
 0x1fb   : > { %659 = vadd.xlane.f32.xlu0 %v1673_v57  ;;  %657 = vadd.xlane.f32.xlu1 %v1671_v54 }
 0x1fc   : > { %v1677_v59 = vpop.eup %1252 }
 0x1fe   : > { %v1679_v60 = vpop.eup %1254 }
 0x1ff   : > { %663 = vadd.xlane.f32.xlu0 %v1679_v60  ;;  %661 = vadd.xlane.f32.xlu1 %v1677_v59 }
 0x200   : > { %v1683_v62 = vpop.eup %1256 }
 0x203   : > { %665 = vadd.xlane.f32.xlu1 %v1683_v62 }
 0x270   : > { %v636_v0 = vpop.xlane.xlu0 %635 }
 0x271   : > { %1258 = vrcp.f32 %v636_v0 }
 0x274   : > { %v640_v1 = vpop.xlane.xlu0 %639  ;;  %v638_v2 = vpop.xlane.xlu1 %637 }
 0x275   : > { %1260 = vrcp.f32 %v640_v1 }
 0x276   : > { %1262 = vrcp.f32 %v638_v2 }
 0x278   : > { %v644_v3 = vpop.xlane.xlu0 %643  ;;  %v642_v4 = vpop.xlane.xlu1 %641 }
 0x279   : > { %1264 = vrcp.f32 %v644_v3 }
 0x27a   : > { %1266 = vrcp.f32 %v642_v4 }
 0x27b   : > { %v1259_v5 = vpop.eup %1258 }
 0x27c   : > { %v648_v6 = vpop.xlane.xlu0 %647  ;;  %v646_v7 = vpop.xlane.xlu1 %645  ;;  %v683_v8 = vmul.f32 %v1259_v5, %v1630_v16 }
 0x27d   : > { %1268 = vrcp.f32 %v648_v6 }
 0x27e   : > { %1270 = vrcp.f32 %v646_v7  ;;  %699 = vst [vmem:[%s1515_s12] sm:$0xff] %v683_v8 }
 0x27f   : > { %v1261_v9 = vpop.eup %1260 }
 0x280   : > { %v1263_v10 = vpop.eup %1262  ;;  %v652_v11 = vpop.xlane.xlu0 %651  ;;  %v685_v13 = vmul.f32 %v1261_v9, %v1634_v22 }
 0x281   : > { %v650_v12 = vpop.xlane.xlu1 %649  ;;  %1272 = vrcp.f32 %v652_v11  ;;  %v684_v14 = vmul.f32 %v1263_v10, %v1636_v24 }
 0x282   : > { %1274 = vrcp.f32 %v650_v12  ;;  %701 = vst [vmem:[%s1515_s12 + $0x10] sm:$0xff] %v685_v13 }
 0x283   : > { %v1265_v15 = vpop.eup %1264  ;;  %700 = vst [vmem:[%s1515_s12 + $0x8] sm:$0xff] %v684_v14  ;;  %v715_v17 = vpack.c.bf16 %v684_v14, %v683_v8 }
 0x284   : > { %v1267_v16 = vpop.eup %1266  ;;  %v656_v18 = vpop.xlane.xlu0 %655  ;;  %v687_v20 = vmul.f32 %v1265_v15, %v1644_v32 }
 0x285   : > { %v654_v19 = vpop.xlane.xlu1 %653  ;;  %1276 = vrcp.f32 %v656_v18  ;;  %1129 = vmatprep.mubr.bf16.mxu1 %v715_v17  ;;  %v686_v21 = vmul.f32 %v1267_v16, %v1642_v30 }
 0x286   : > { %1278 = vrcp.f32 %v654_v19  ;;  %703 = vst [vmem:[%s1515_s12 + $0x20] sm:$0xff] %v687_v20 }
 0x287   : > { %v1269_v22 = vpop.eup %1268  ;;  %702 = vst [vmem:[%s1515_s12 + $0x18] sm:$0xff] %v686_v21  ;;  %v716_v23 = vpack.c.bf16 %v686_v21, %v685_v13 }
 0x288   : > { %v1271_v24 = vpop.eup %1270  ;;  %v660_v25 = vpop.xlane.xlu0 %659  ;;  %v689_v27 = vmul.f32 %v1269_v22, %v1652_v40 }
 0x289   : > { %v658_v26 = vpop.xlane.xlu1 %657  ;;  %1280 = vrcp.f32 %v660_v25  ;;  %1130 = vmatmul.mubr.bf16.vlgmr.msra.gmra.mrb[0].mxu1 %v716_v23  ;;  %v688_v28 = vmul.f32 %v1271_v24, %v1650_v38 }
 0x28a   : > { %1282 = vrcp.f32 %v658_v26  ;;  %705 = vst [vmem:[%s1515_s12 + $0x30] sm:$0xff] %v689_v27 }
 0x28b   : > { %v1273_v29 = vpop.eup %1272  ;;  %704 = vst [vmem:[%s1515_s12 + $0x28] sm:$0xff] %v688_v28  ;;  %v717_v30 = vpack.c.bf16 %v688_v28, %v687_v20 }
 0x28c   : > { %v1275_v31 = vpop.eup %1274  ;;  %v664_v32 = vpop.xlane.xlu0 %663  ;;  %v691_v34 = vmul.f32 %v1273_v29, %v1660_v49 }
 0x28d   : > { %v662_v33 = vpop.xlane.xlu1 %661  ;;  %1284 = vrcp.f32 %v664_v32  ;;  %1133 = vmatprep.mubr.bf16.mxu1 %v717_v30  ;;  %v690_v35 = vmul.f32 %v1275_v31, %v1658_v46 }
 0x28e   : > { %1286 = vrcp.f32 %v662_v33  ;;  %707 = vst [vmem:[%s1515_s12 + $0x40] sm:$0xff] %v691_v34 }
 0x28f   : > { %v1277_v36 = vpop.eup %1276  ;;  %706 = vst [vmem:[%s1515_s12 + $0x38] sm:$0xff] %v690_v35  ;;  %v718_v37 = vpack.c.bf16 %v690_v35, %v689_v27 }
 0x290   : > { %v1279_v38 = vpop.eup %1278  ;;  %v693_v40 = vmul.f32 %v1277_v36, %v1667_v52 }
 0x291   : > { %v666_v39 = vpop.xlane.xlu1 %665  ;;  %1134 = vmatmul.mubr.bf16.gmra.mrb[4].mxu1 %v718_v37  ;;  %v692_v41 = vmul.f32 %v1279_v38, %v1665_v55 }
 0x292   : > { %1288 = vrcp.f32 %v666_v39  ;;  %709 = vst [vmem:[%s1515_s12 + $0x50] sm:$0xff] %v693_v40 }
 0x293   : > { %v1281_v42 = vpop.eup %1280  ;;  %708 = vst [vmem:[%s1515_s12 + $0x48] sm:$0xff] %v692_v41  ;;  %v719_v43 = vpack.c.bf16 %v692_v41, %v691_v34 }
 0x294   : > { %v1283_v44 = vpop.eup %1282  ;;  %v695_v45 = vmul.f32 %v1281_v42, %v1673_v57 }
 0x295   : > { %1137 = vmatprep.mubr.bf16.mxu1 %v719_v43  ;;  %v694_v46 = vmul.f32 %v1283_v44, %v1671_v54 }
 0x296   : > { %711 = vst [vmem:[%s1515_s12 + $0x60] sm:$0xff] %v695_v45 }
 0x297   : > { %v1285_v47 = vpop.eup %1284  ;;  %710 = vst [vmem:[%s1515_s12 + $0x58] sm:$0xff] %v694_v46  ;;  %v720_v48 = vpack.c.bf16 %v694_v46, %v693_v40 }
 0x298   : > { %v1287_v49 = vpop.eup %1286  ;;  %v697_v50 = vmul.f32 %v1285_v47, %v1679_v60 }
 0x299   : > { %1138 = vmatmul.mubr.bf16.gmra.mrb[8].mxu1 %v720_v48  ;;  %v696_v51 = vmul.f32 %v1287_v49, %v1677_v59 }
 0x29a   : > { %713 = vst [vmem:[%s1515_s12 + $0x70] sm:$0xff] %v697_v50 }
 0x29b   : > { %712 = vst [vmem:[%s1515_s12 + $0x68] sm:$0xff] %v696_v51  ;;  %v721_v55 = vpack.c.bf16 %v696_v51, %v695_v45 }
 0x29c   : > { %v1289_v53 = vpop.eup %1288 }
 0x29d   : > { %v698_v52 = vmul.f32 %v1289_v53, %v1683_v62  ;;  %1141 = vmatprep.mubr.bf16.mxu1 %v721_v55 }
 0x29f   : > { %714 = vst [vmem:[%s1515_s12 + $0x78] sm:$0xff] %v698_v52  ;;  %v722_v56 = vpack.c.bf16 %v698_v52, %v697_v50 }
 0x2a1   : > { %1142 = vmatmul.mubr.bf16.gmra.mrb[12].mxu1 %v722_v56 }
 0x2a2   : > { %1303 = shalt.err (!%p1300_p9)
}
 0x2a3   : > { %s1304_s23 = scalar_lea.hbm %s1724_s7, 2048  ;;  %s1308_s30 = scalar_lea.hbm %s1818_s4, 8192 }
 0x2a4   : > { %p1305_p10 = scmp.ne.s32.totalorder %s1724_s7, %s1304_s23  ;;  %p1309_p13 = scmp.lt.u32.totalorder %s1724_s7, %s1818_s4 }
 0x2a5   : > { %p1310_p0 = scmp.lt.u32.totalorder %s1308_s30, %s1304_s23  ;;  %p1312_p2 = scmp.lt.u32.totalorder %s1304_s23, %s1724_s7 }
 0x2a6   : > { %p1306_p11 = pnand %p1305_p10, %p1465_p3 }
 0x2a7   : > { %p1311_p1 = por %p1310_p0, %p1309_p13 }
 0x2a8   : > { %p1307_p12 = pneg %p1306_p11 }
 0x2a9   : > { %p1313_p4 = por %p1312_p2, %p1311_p1 }
 0x2ab   : > { %p1314_p5 = pnand %p1313_p4, %p1307_p12 }
 0x2ad   : > { %1317 = shalt.err (!%p1314_p5)
}
 0x2ae   : > { %s1387_s12 = smov 128   ;;  %s1388_s17 = smov 8  }
 0x2af   : > { %1153 = dma.vmem_to_hbm [thread:$0]  (%p1465_p3), %s1726_s21, 2048, %s1724_s7, %s1730_s10, %s1387_s12, %s1387_s12, %s1388_s17  }
 0x35c   : > { %v1131_v54 = vpop.f32.mrb[0].mxu1 }
 0x35d   : > { %830 = vst.msk [vmem:[%s1513_s11 + $0x10] sm:$0xff] %vm409_vm1, %v1131_v54  ;;  %v765_v57 = vpop.f32.mrb[1].mxu1 }
 0x35e   : > { %828 = vst.msk [vmem:[%s1513_s11] sm:$0xff] %vm409_vm1, %v765_v57  ;;  %v1132_v58 = vpop.f32.mrb[2].mxu1 }
 0x35f   : > { %831 = vst.msk [vmem:[%s1513_s11 + $0x18] sm:$0xff] %vm409_vm1, %v1132_v58  ;;  %v768_v59 = vpop.f32.mrb[3].mxu1 }
 0x360   : > { %829 = vst.msk [vmem:[%s1513_s11 + $0x8] sm:$0xff] %vm409_vm1, %v768_v59 }
 0x364   : > { %v1135_v60 = vpop.f32.mrb[4].mxu1 }
 0x365   : > { %834 = vst.msk [vmem:[%s1513_s11 + $0x30] sm:$0xff] %vm409_vm1, %v1135_v60  ;;  %v781_v61 = vpop.f32.mrb[5].mxu1 }
 0x366   : > { %832 = vst.msk [vmem:[%s1513_s11 + $0x20] sm:$0xff] %vm409_vm1, %v781_v61  ;;  %v1136_v62 = vpop.f32.mrb[6].mxu1 }
 0x367   : > { %835 = vst.msk [vmem:[%s1513_s11 + $0x38] sm:$0xff] %vm409_vm1, %v1136_v62  ;;  %v784_v63 = vpop.f32.mrb[7].mxu1 }
 0x368   : > { %833 = vst.msk [vmem:[%s1513_s11 + $0x28] sm:$0xff] %vm409_vm1, %v784_v63 }
 0x36c   : > { %v1139_v0 = vpop.f32.mrb[8].mxu1 }
 0x36d   : > { %838 = vst.msk [vmem:[%s1513_s11 + $0x50] sm:$0xff] %vm409_vm1, %v1139_v0  ;;  %v797_v1 = vpop.f32.mrb[9].mxu1 }
 0x36e   : > { %836 = vst.msk [vmem:[%s1513_s11 + $0x40] sm:$0xff] %vm409_vm1, %v797_v1  ;;  %v1140_v2 = vpop.f32.mrb[10].mxu1 }
 0x36f   : > { %839 = vst.msk [vmem:[%s1513_s11 + $0x58] sm:$0xff] %vm409_vm1, %v1140_v2  ;;  %v800_v3 = vpop.f32.mrb[11].mxu1 }
 0x370   : > { %837 = vst.msk [vmem:[%s1513_s11 + $0x48] sm:$0xff] %vm409_vm1, %v800_v3 }
 0x374   : > { %v1143_v4 = vpop.f32.mrb[12].mxu1 }
 0x375   : > { %842 = vst.msk [vmem:[%s1513_s11 + $0x70] sm:$0xff] %vm409_vm1, %v1143_v4  ;;  %v813_v5 = vpop.f32.mrb[13].mxu1 }
 0x376   : > { %840 = vst.msk [vmem:[%s1513_s11 + $0x60] sm:$0xff] %vm409_vm1, %v813_v5  ;;  %v1144_v6 = vpop.f32.mrb[14].mxu1 }
 0x377   : > { %843 = vst.msk [vmem:[%s1513_s11 + $0x78] sm:$0xff] %vm409_vm1, %v1144_v6  ;;  %v816_v7 = vpop.f32.mrb[15].mxu1 }
 0x378   : > { %841 = vst.msk [vmem:[%s1513_s11 + $0x68] sm:$0xff] %vm409_vm1, %v816_v7 }
 0x379 PF: > { %p1159_p3 = scmp.ge.s32.totalorder %s1384_s22, 2  ;;  %s900_s28 = sand.u32 1, %s1356_s15  }
 0x37a   : > { %s901_s18 = scalar_lea.sflag [#allocation5], %s900_s28 }
 0x37b   : > { %p1156_p6 = pnand %p1159_p3, %p1474_p8 }
 0x37d   : > { %1351 = dma.done.wait (!%p1156_p6), %s901_s18, 2048  }
 0x37e   : > { %1353 = vsyncadd (!%p1156_p6), %s901_s18, 4294965248  ;;  %s18_s22 = sadd.s32 1, %s1384_s22   ;;  %s1834_s20 = sld [smem:[#allocation7_spill]] }
 0x37f   : > { %p15_p7 = scmp.ge.s32.totalorder %s18_s22, 6   ;;  %s1835_s17 = sld [smem:[#allocation12_spill]] }
 0x380   : > { %s1836_s18 = sld [smem:[#allocation8_spill]]  ;;  %s1837_s19 = sld [smem:[#allocation9_spill]] }
 0x381   : > { %s1838_s11 = sld [smem:[#allocation10_spill]]  ;;  %s1839_s21 = sld [smem:[#allocation11_spill]] }
 0x382   : > { %s1840_s15 = smov %s1360_s16  ;;  %17 = sbr.rel (!%p15_p7) target bundleno = 5 (0x5), region = 89 }
 0x384   : > { %s1841_s16 = smov %s1834_s20 }
 0x387   : > { %s1842_s20 = smov %s1838_s11 }
 0x389   :  { %906 = vsyncpa [#allocation5], 1 }
 0x38a   :  { %908 = vsyncpa [#allocation5 + $0x1], 1 }

</bundles_post_ra>
